<compile_context>
chip_gen: v5e
topology: v5e:2x2
jax: 0.10.0
libtpu: 0.0.40
codegen_flags: <defaults>
</compile_context>

<pallas_src>
import functools

import jax
import jax.numpy as jnp
from jax.experimental import pallas as pl
from jax.experimental.pallas import tpu as pltpu


# --------------------------------------------------------------------------------------
# Tile / VMEM helpers (generation-aware)
# --------------------------------------------------------------------------------------
def _pick_tile(n, prefs=(256, 128)):
    """Prefer 256: at L=512 that gives >=2 steps per L axis, so the BlockSpec pipeline
    has work to overlap and each of v7x's two TensorCores gets >=4 grid steps, while the
    per-step VMEM stays a few MB on every generation.  Full-dim block is the (always
    legal) fallback for small / non-128-aligned L."""
    for t in prefs:
        if n >= t and n % t == 0:
            return t
    return n


def _vmem_budget_bytes():
    """Conservative per-kernel VMEM budget: stay well inside the default scoped limit on
    every chip (16 MiB v5e, 32 MiB v6e, 32-of-64 MiB v7x)."""
    budget = 12 << 20
    try:
        cap = int(getattr(pltpu.get_tpu_info(), "vmem_capacity_bytes", 0) or 0)
        if cap:
            budget = min(budget, cap // 6)   # v7x (64 MiB physical) -> ~10.6 MiB
    except Exception:                        # interpret mode / CPU AOT etc.
        pass
    return budget


# --------------------------------------------------------------------------------------
# Kernel 1: fused ffnn_start | ffnn_end projection  (h @ [Ws | We] + [bs,1,0.. | be,1,0..])
# --------------------------------------------------------------------------------------
def _proj_kernel(h_ref, w_ref, b_ref, out_ref):
    # h_ref: (1, TL, D)   w_ref: (D, 2*K_pad)   b_ref: (1, 2*K_pad) f32
    acc = jnp.dot(h_ref[0], w_ref[...], preferred_element_type=jnp.float32)
    acc = acc + b_ref[...]                       # bias adds the biaffine "ones" column too
    out_ref[0] = acc.astype(out_ref.dtype)


def fused_projection(h, w_cat, b_cat, *, compute_dtype, tl=None):
    """h:(B,L,D) -> xs_aug|ye_aug packed as (B, L, 2*K_pad)."""
    B, L, D = h.shape
    two_k = w_cat.shape[1]
    tl = tl or _pick_tile(L)
    grid = (B, L // tl)
    return pl.pallas_call(
        _proj_kernel,
        out_shape=jax.ShapeDtypeStruct((B, L, two_k), compute_dtype),
        grid_spec=pltpu.PrefetchScalarGridSpec(
            num_scalar_prefetch=0,
            grid=grid,
            in_specs=[
                pl.BlockSpec((1, tl, D), lambda b, l: (b, l, 0)),
                pl.BlockSpec((D, two_k), lambda b, l: (0, 0)),      # weight resident in VMEM
                pl.BlockSpec((1, two_k), lambda b, l: (0, 0)),      # bias resident in VMEM
            ],
            out_specs=pl.BlockSpec((1, tl, two_k), lambda b, l: (b, l, 0)),
        ),
        compiler_params=pltpu.CompilerParams(
            dimension_semantics=("parallel", "parallel")),
    )(h.astype(compute_dtype), w_cat.astype(compute_dtype), b_cat.astype(jnp.float32))


# --------------------------------------------------------------------------------------
# Kernel 2: staged biaffine score  (B, n_out, L, L)
# --------------------------------------------------------------------------------------
def _biaffine_kernel(xs_ref, ye_ref, w_ref, out_ref, u_ref, *, n_out, ti):
    # xs_ref: (1, TI, K)   ye_ref: (1, TJ, K)   w_ref: (n_out, K, K)
    # out_ref: (1, n_out, TI, TJ)   u_ref: (n_out*TI, K) compute-dtype scratch
    #
    # Stage 1 (amortized over the j axis, which is innermost & "arbitrary"):
    #   U[o*TI:(o+1)*TI, :] = xs_aug @ W[o], accumulated in f32, cast to the compute
    #   dtype exactly once per (b, i-tile).
    @pl.when(pl.program_id(2) == 0)
    def _():
        xs = xs_ref[0]                                           # (TI, K)
        for o in range(n_out):                                   # n_out small & static
            u = jnp.dot(xs, w_ref[o], preferred_element_type=jnp.float32)
            u_ref[o * ti:(o + 1) * ti, :] = u.astype(u_ref.dtype)

    # Stage 2: ONE wide MXU matmul per j tile (ye pushed through the MXU once, not n_out
    # times); contiguous reshape to (n_out, TI, TJ) for a single lane-dense store.
    s = jax.lax.dot_general(                                     # (n_out*TI, TJ), f32 acc
        u_ref[...], ye_ref[0],
        dimension_numbers=(((1,), (1,)), ((), ())),
        preferred_element_type=jnp.float32)
    out_ref[0] = s.reshape(n_out, ti, s.shape[-1]).astype(out_ref.dtype)


def biaffine_score(h, w_start, b_start, w_end, b_end, w_bi, *,
                   compute_dtype=jnp.bfloat16, out_dtype=jnp.bfloat16,
                   ti=None, tj=None):
    """Full scoring path: projections + biaffine.  Returns (B, n_out, L, L)."""
    B, L, D = h.shape
    n_out, kx, ky = w_bi.shape
    n_in = w_start.shape[1]
    assert kx == n_in + 1 and ky == n_in + 1, "biaffine weight must include bias_x/bias_y"
    k_pad = ((n_in + 1 + 127) // 128) * 128        # 151 -> 256, lane aligned

    # ---- one-time weight preprocessing (plain JAX, tiny) ----
    # Concatenated projection weight; the ones column sits at index n_in (before padding)
    # and is produced by a +1.0 bias entry.  Padded rows/cols are zero (numerically free).
    w_cat = jnp.zeros((D, 2 * k_pad), jnp.float32)
    w_cat = w_cat.at[:, :n_in].set(w_start)
    w_cat = w_cat.at[:, k_pad:k_pad + n_in].set(w_end)
    b_cat = jnp.zeros((2 * k_pad,), jnp.float32)
    b_cat = b_cat.at[:n_in].set(b_start).at[n_in].set(1.0)
    b_cat = b_cat.at[k_pad:k_pad + n_in].set(b_end).at[k_pad + n_in].set(1.0)
    b_cat = b_cat.reshape(1, 2 * k_pad)

    # Biaffine weight, zero-padded per label: (n_out, K_pad, K_pad)
    w_pad = jnp.zeros((n_out, k_pad, k_pad), jnp.float32)
    w_pad = w_pad.at[:, :kx, :ky].set(w_bi)

    # ---- stage 0: fused projection (one pass over h) ----
    xsye = fused_projection(h, w_cat, b_cat, compute_dtype=compute_dtype)

    # ---- tile selection: prefer 256 tiles, cap by a generation-aware VMEM estimate ----
    auto_ti, auto_tj = ti is None, tj is None
    ti = ti or _pick_tile(L)
    tj = tj or _pick_tile(L)
    cdb = jnp.dtype(compute_dtype).itemsize
    odb = jnp.dtype(out_dtype).itemsize

    def _est(a, b):
        return (2 * a * k_pad * cdb                      # xs blocks (double-buffered)
                + 2 * b * k_pad * cdb                    # ye blocks
                + 2 * n_out * k_pad * k_pad * cdb        # resident weight (2-buffered)
                + 2 * n_out * a * b * odb                # output blocks
                + n_out * a * k_pad * cdb)               # U scratch (single buffer)

    budget = _vmem_budget_bytes()
    while (auto_ti or auto_tj) and _est(ti, tj) > budget:
        # Shrink while staying a 128-multiple divisor of L; j first (keeps stage-1 amortized).
        if auto_tj and tj > 128 and tj % 256 == 0:
            tj //= 2
        elif auto_ti and ti > 128 and ti % 256 == 0:
            ti //= 2
        else:
            break   # full-dim fallback for non-aligned L: still legal, just larger blocks

    # ---- stages 1+2: staged biaffine ----
    grid = (B, L // ti, L // tj)
    kernel = functools.partial(_biaffine_kernel, n_out=n_out, ti=ti)

    score = pl.pallas_call(
        kernel,
        out_shape=jax.ShapeDtypeStruct((B, n_out, L, L), out_dtype),
        grid_spec=pltpu.PrefetchScalarGridSpec(
            num_scalar_prefetch=0,
            grid=grid,
            in_specs=[
                # xs_aug: first K_pad features of the packed projection
                pl.BlockSpec((1, ti, k_pad), lambda b, i, j: (b, i, 0)),
                # ye_aug: second K_pad features, streamed over j
                # (bump pipeline depth with pipeline_mode=pl.Buffered(3) only if a trace
                #  shows exposed DMA)
                pl.BlockSpec((1, tj, k_pad), lambda b, i, j: (b, j, 1)),
                # biaffine weight: constant index_map -> VMEM resident across the grid
                pl.BlockSpec((n_out, k_pad, k_pad), lambda b, i, j: (0, 0, 0)),
            ],
            out_specs=pl.BlockSpec((1, n_out, ti, tj), lambda b, i, j: (b, 0, i, j)),
            # U for all labels, compute dtype, written once per (b, i-tile) under
            # pl.when(j == 0) and reused across the (innermost, sequential) j axis.
            scratch_shapes=[pltpu.VMEM((n_out * ti, k_pad), compute_dtype)],
        ),
        compiler_params=pltpu.CompilerParams(
            dimension_semantics=("parallel", "parallel", "arbitrary")),
    )(xsye, xsye, w_pad.astype(compute_dtype))
    return score


# --------------------------------------------------------------------------------------
# Loss glue that consumes the kernel's (B, n_out, L, L) layout directly (no permute).
# --------------------------------------------------------------------------------------
def cross_entropy_bnll(score_bnll, targets, ignore_index=0):
    """CrossEntropyLoss(ignore_index, reduction='mean') with class axis = dim 1."""
    logits = score_bnll.astype(jnp.float32)
    logz = jax.nn.logsumexp(logits, axis=1)                                     # (B, L, L)
    gold = jnp.take_along_axis(logits, targets[:, None, :, :], axis=1)[:, 0]    # (B, L, L)
    nll = logz - gold
    mask = targets != ignore_index
    denom = jnp.maximum(mask.sum(), 1).astype(jnp.float32)
    return jnp.where(mask, nll, 0.0).sum() / denom


# --------------------------------------------------------------------------------------
# Pure-JAX references (mirror the PyTorch math exactly) for correctness checking.
# --------------------------------------------------------------------------------------
def reference_score(h, w_start, b_start, w_end, b_end, w_bi):
    xs = jnp.einsum('bld,dk->blk', h, w_start, precision='highest') + b_start
    ye = jnp.einsum('bld,dk->blk', h, w_end, precision='highest') + b_end
    ones = jnp.ones(xs.shape[:-1] + (1,), xs.dtype)
    xs_a = jnp.concatenate([xs, ones], axis=-1)
    ye_a = jnp.concatenate([ye, ones], axis=-1)
    return jnp.einsum('bxi,oij,byj->boxy', xs_a, w_bi, ye_a, precision='highest')


def reference_loss(score_boxy, targets, ignore_index=0):
    # PyTorch path: permute(0,2,3,1) -> reshape(-1, n_out) -> CE(ignore_index=0, mean)
    n_out = score_boxy.shape[1]
    logits = jnp.transpose(score_boxy, (0, 2, 3, 1)).reshape(-1, n_out).astype(jnp.float32)
    t = targets.reshape(-1)
    logz = jax.nn.logsumexp(logits, axis=-1)
    gold = jnp.take_along_axis(logits, t[:, None], axis=1)[:, 0]
    nll = logz - gold
    mask = t != ignore_index
    return jnp.where(mask, nll, 0.0).sum() / jnp.maximum(mask.sum(), 1).astype(jnp.float32)


# --------------------------------------------------------------------------------------
if __name__ == "__main__":
    key = jax.random.PRNGKey(0)
    B, L, D = 2, 16, 64           # small test shapes (real: L ~ 512, D = 768)
    n_in, n_out = 150, 5          # module hard-codes n_in=150; n_out = label vocab size

    ks = jax.random.split(key, 7)
    h = jax.random.normal(ks[0], (B, L, D), jnp.float32)         # = Bert_Encoder output
    w_start = jax.random.normal(ks[1], (D, n_in), jnp.float32) / jnp.sqrt(D)
    b_start = jax.random.normal(ks[2], (n_in,), jnp.float32) * 0.1
    w_end = jax.random.normal(ks[3], (D, n_in), jnp.float32) / jnp.sqrt(D)
    b_end = jax.random.normal(ks[4], (n_in,), jnp.float32) * 0.1
    w_bi = jax.random.normal(ks[5], (n_out, n_in + 1, n_in + 1), jnp.float32) / jnp.sqrt(n_in + 1)
    tags = jax.random.randint(ks[6], (B, L, L), 0, n_out, jnp.int32)

    ref = reference_score(h, w_start, b_start, w_end, b_end, w_bi)
    scale = float(jnp.max(jnp.abs(ref))) + 1e-6

    # --- f32 run: tight check against the pure-JAX reference -------------------------
    score_f32 = biaffine_score(h, w_start, b_start, w_end, b_end, w_bi,
                               compute_dtype=jnp.float32, out_dtype=jnp.float32)
    score_f32 = jax.block_until_ready(score_f32)
    err = float(jnp.max(jnp.abs(score_f32 - ref)))
    assert err <= 1e-2 * scale + 1e-2, f"f32 score mismatch: max|err|={err}, scale={scale}"

    loss_k = float(cross_entropy_bnll(score_f32, tags))
    loss_r = float(reference_loss(ref, tags))
    assert abs(loss_k - loss_r) <= 1e-2 + 1e-2 * abs(loss_r), (loss_k, loss_r)

    # --- bf16 production config (bf16 storage, f32 accumulation): loose check --------
    score_bf16 = biaffine_score(h, w_start, b_start, w_end, b_end, w_bi,
                                compute_dtype=jnp.bfloat16, out_dtype=jnp.bfloat16)
    score_bf16 = jax.block_until_ready(score_bf16)
    err_bf16 = float(jnp.max(jnp.abs(score_bf16.astype(jnp.float32) - ref)))
    assert err_bf16 <= 0.1 * scale + 0.5, f"bf16 score mismatch: max|err|={err_bf16}"

    print("KERNEL_OK")
</pallas_src>

<mosaic_0001>
module attributes {stable_mosaic.version = 11 : i64} {
  func.func @_proj_kernel(%arg0: i32, %arg1: i32, %arg2: memref<1x16x64xf32, #tpu.memory_space<vmem>>, %arg3: memref<64x512xf32, #tpu.memory_space<vmem>>, %arg4: memref<1x512xf32, #tpu.memory_space<vmem>>, %arg5: memref<1x16x512xf32, #tpu.memory_space<vmem>>) attributes {dimension_semantics = [#tpu.dimension_semantics<parallel>, #tpu.dimension_semantics<parallel>], iteration_bounds = array<i64: 2, 1>, scalar_prefetch = 0 : i64, scratch_operands = 0 : i64, tpu.core_type = #tpu.core_type<tc>, window_params = [{transform_indices = @transform_0, window_bounds = array<i64: 1, 16, 64>}, {pipeline_mode = #tpu.pipeline_mode<synchronous>, transform_indices = @transform_1, window_bounds = array<i64: 64, 512>}, {pipeline_mode = #tpu.pipeline_mode<synchronous>, transform_indices = @transform_2, window_bounds = array<i64: 1, 512>}, {transform_indices = @transform_3, window_bounds = array<i64: 1, 16, 512>}]} {
    %c0 = arith.constant 0 : index
    %c0_0 = arith.constant 0 : index
    %c0_1 = arith.constant 0 : index
    %0 = vector.load %arg2[%c0, %c0_0, %c0_1] : memref<1x16x64xf32, #tpu.memory_space<vmem>>, vector<1x16x64xf32>
    %1 = vector.shape_cast %0 : vector<1x16x64xf32> to vector<16x64xf32>
    %c0_2 = arith.constant 0 : index
    %c0_3 = arith.constant 0 : index
    %2 = vector.load %arg3[%c0_2, %c0_3] : memref<64x512xf32, #tpu.memory_space<vmem>>, vector<64x512xf32>
    %cst = arith.constant dense<0.000000e+00> : vector<16x512xf32>
    %3 = tpu.matmul %1, %2, %cst {dimension_numbers = #tpu.dot_dimension_numbers<[1], [0], [0], [1], [0, 0, 1, 1], [], []>} : vector<16x64xf32>, vector<64x512xf32>, vector<16x512xf32> -> vector<16x512xf32>
    %c0_4 = arith.constant 0 : index
    %c0_5 = arith.constant 0 : index
    %4 = vector.load %arg4[%c0_4, %c0_5] : memref<1x512xf32, #tpu.memory_space<vmem>>, vector<1x512xf32>
    %5 = vector.broadcast %4 : vector<1x512xf32> to vector<16x512xf32>
    %6 = arith.addf %3, %5 : vector<16x512xf32>
    %c0_6 = arith.constant 0 : index
    %c0_7 = arith.constant 0 : index
    %c0_8 = arith.constant 0 : index
    %7 = vector.load %arg5[%c0_6, %c0_7, %c0_8] : memref<1x16x512xf32, #tpu.memory_space<vmem>>, vector<1x16x512xf32>
    %8 = vector.shape_cast %7 : vector<1x16x512xf32> to vector<16x512xf32>
    %9 = vector.shape_cast %6 : vector<16x512xf32> to vector<1x16x512xf32>
    tpu.vector_store %arg5[%c0_6, %c0_7, %c0_8], %9 {strides = array<i32>} : memref<1x16x512xf32, #tpu.memory_space<vmem>>, vector<1x16x512xf32>,
    return
  }
  func.func @transform_0(%arg0: i32, %arg1: i32) -> (i32, i32, i32) {
    %c0_i32 = arith.constant 0 : i32
    %c0_i32_0 = arith.constant 0 : i32
    return %arg0, %arg1, %c0_i32 : i32, i32, i32
  }
  func.func @transform_1(%arg0: i32, %arg1: i32) -> (i32, i32) {
    %c0_i32 = arith.constant 0 : i32
    %c0_i32_0 = arith.constant 0 : i32
    %c0_i32_1 = arith.constant 0 : i32
    return %c0_i32, %c0_i32_0 : i32, i32
  }
  func.func @transform_2(%arg0: i32, %arg1: i32) -> (i32, i32) {
    %c0_i32 = arith.constant 0 : i32
    %c0_i32_0 = arith.constant 0 : i32
    %c0_i32_1 = arith.constant 0 : i32
    return %c0_i32, %c0_i32_0 : i32, i32
  }
  func.func @transform_3(%arg0: i32, %arg1: i32) -> (i32, i32, i32) {
    %c0_i32 = arith.constant 0 : i32
    %c0_i32_0 = arith.constant 0 : i32
    return %arg0, %arg1, %c0_i32 : i32, i32, i32
  }
}

</mosaic_0001>

<bundles_post_ra>
// kernel: tpu_custom_call.1
= control target key start
LH: loop header
LB: loop body
LE: loop exit
PB: predicated region body
PF: predicated region fallthrough
CT: control target
= control target key end

     0   :  { %s1012_s0 = inlined_call_operand.hbm [shape: f32[2,16,64], index: 0, kind: input, shape index: {}]   ;;  %s1013_s1 = inlined_call_operand.hbm [shape: f32[64,512], index: 1, kind: input, shape index: {}]   ;;  %s1014_s2 = inlined_call_operand.hbm [shape: f32[1,512], index: 2, kind: input, shape index: {}]   ;;  %s1015_s3 = inlined_call_operand.hbm [shape: f32[2,16,512], index: 3, kind: output, shape index: {}]  }
   0x1   :  { %1016 = sst [smem:[#allocation12_spill]] %s1013_s1 }
   0x2   :  { %8 = vsyncpa [#allocation3], 0 }
   0x3   :  { %10 = vsyncpa [#allocation3 + $0x1], 0 }
   0x4   :  { %11 = vsyncpa [#allocation6], 0 }
   0x5   :  { %12 = vsyncpa [#allocation4], 0 }
   0x6   :  { %14 = vsyncpa [#allocation4 + $0x1], 0  ;;  %s842_s12 = smov 0   ;;  %s844_s13 = smov 0  }
   0x7   :  { %s846_s14 = smov 0   ;;  %s848_s15 = smov 0  }
   0x8   :  { %s850_s16 = smov 0   ;;  %s852_s17 = smov 0  }
   0x9 LB: > { %s518_s18 = sadd.s32 4294967295, %s812_s17   ;;  %s519_s19 = sadd.s32 4294967294, %s812_s17   ;;  %s812_s17 = sphi %s852_s17, %s20_s17   ;;  %s808_s16 = sphi %s850_s16, %s1029_s16   ;;  %s804_s15 = sphi %s848_s15, %s1028_s15   ;;  %s800_s14 = sphi %s846_s14, %s1027_s14   ;;  %s796_s13 = sphi %s844_s13, %s1026_s13   ;;  %s792_s12 = sphi %s842_s12, %s1025_s12  }
   0xa   : > { %p54_p0 = scmp.ne.s32.totalorder %s796_s13, %s792_s12  ;;  %p876_p1 = scmp.eq.s32.totalorder %s518_s18, 0 }
   0xb   : > { %p880_p2 = scmp.eq.s32.totalorder %s518_s18, 1  ;;  %p128_p3 = scmp.eq.s32.totalorder %s519_s19, 1 }
   0xc   : > { %p886_p4 = por %p876_p1, %p54_p0  ;;  %p520_p5 = scmp.ge.s32.totalorder %s812_s17, 1 }
   0xd   : > { %p891_p6 = por %p128_p3, %p54_p0  ;;  %p135_p7 = scmp.lt.s32.totalorder %s812_s17, 3 }
   0xe   : > { %s1021_s1 = sld [smem:[#allocation12_spill]]  ;;  %s814_s28 = smov [#allocation5]  }
   0xf   : > { %p899_p8 = pnand %p520_p5, %p135_p7  ;;  %s148_s29 = sshll.u32 %s814_s28, 4  ;;  %s149_s29 = int_to_ptr.vmem [resolvable:$true] %s148_s29 }
  0x10   : > { %p523_p11 = scmp.ge.s32.totalorder %s812_s17, 2  ;;  %s161_s5 = sshll.u32 %s1014_s2, 4  ;;  %s162_s5 = int_to_ptr.hbm [resolvable:$true] %s161_s5 }
  0x11   : > { %p559_p9 = pneg %p899_p8  ;;  %s815_s6 = smov 512  }
  0x12   : > { %s816_s7 = smov 32   ;;  %s817_s8 = smov [#allocation7]  }
  0x13   : > { %p560_p10 = pnand %p559_p9, %p876_p1  ;;  %s163_s9 = sshll.u32 %s817_s8, 4  ;;  %s164_s9 = int_to_ptr.vmem [resolvable:$true] %s163_s9 }
  0x14   : > { %s146_s26 = sshll.u32 %s1021_s1, 4  ;;  %s32_s10 = sadd.s32 1, %s808_s16  ;;  %s147_s26 = int_to_ptr.hbm [resolvable:$true] %s146_s26 }
  0x15   : > { %562 = dma.hbm_to_vmem [thread:$0]  (!%p560_p10), %s147_s26, 4096, %s149_s29, [#allocation6], %s815_s6, %s815_s6, %s816_s7  }
  0x16   : > { %565 = dma.hbm_to_vmem [thread:$0]  (!%p560_p10), %s162_s5, 64, %s164_s9, [#allocation6]  }
  0x17   : > { %s41_s11 = sadd.s32 1, %s800_s14  ;;  %p34_p12 = scmp.ge.s32.totalorder %s32_s10, 2 }
  0x18   : > { %p48_p13 = scmp.ne.s32.totalorder %s800_s14, %s796_s13  ;;  %p49_p0 = scmp.eq.s32.totalorder %s812_s17, 0 }
  0x19   : > { %p576_p3 = scmp.lt.s32.totalorder %s812_s17, 2  ;;  %s1031_s10 = smov (%p34_p12, %s32_s10), 0 }
  0x1a   : > { %p919_p5 = por %p49_p0, %p48_p13  ;;  %p925_p7 = por %p880_p2, %p48_p13 }
  0x1b   : > { %s36_s24 = ssub.s32 %s808_s16, %s1031_s10  ;;  %s174_s25 = sand.u32 1, %s800_s14  }
  0x1c   : > { %p39_p9 = scmp.eq.s32.totalorder %s36_s24, 0  ;;  %s524_s26 = sshll.u32 %s174_s25, 4 }
  0x1d   : > { %s545_s28 = sshll.u32 %s808_s16, 4  ;;  %s178_s7 = scalar_lea.vmem [#allocation2], %s524_s26 }
  0x1e   : > { %s934_s29 = scalar_select %p39_p9, %s800_s14, %s41_s11  }
  0x1f   : > { %s185_s5 = scalar_lea.hbm %s1012_s0, %s545_s28  ;;  %s188_s8 = sshll.u32 %s178_s7, 4  ;;  %s189_s8 = int_to_ptr.vmem [resolvable:$true] %s188_s8 }
  0x20   : > { %s186_s6 = sshll.u32 %s185_s5, 4  ;;  %p567_p2 = pnand %p576_p3, %p919_p5  ;;  %s187_s6 = int_to_ptr.hbm [resolvable:$true] %s186_s6 }
  0x21   : > { %s175_s21 = scalar_lea.sflag [#allocation3], %s174_s25  ;;  %s818_s9 = smov 128  }
  0x22   : > { %s819_s1 = smov 8   ;;  %200 = sbr.rel (%p899_p8) target bundleno = 205 (0xcd), region = 32 }
  0x23   : > { %569 = dma.hbm_to_vmem [thread:$0]  (!%p567_p2), %s187_s6, 256, %s189_s8, %s175_s21, %s818_s9, %s818_s9, %s819_s1  }
  0x24   : > { %s946_s11 = sand.u32 (!%p899_p8), 1, %s796_s13  }
  0x25   : > { %s528_s24 = sshll.u32 (!%p899_p8), %s946_s11, 4  ;;  %s203_s26 = scalar_lea.sflag (!%p899_p8), [#allocation3], %s946_s11 }
  0x26   : > { %s950_s28 = scalar_lea.vmem (!%p899_p8), [#allocation2], %s528_s24 }
  0x27   : > { %779 = dma.done.wait (%p886_p4), %s203_s26, 256  }
  0x28   : > { %781 = vsyncadd (%p886_p4), %s203_s26, 4294967040 }
  0x29   : > { %783 = dma.done.wait (%p876_p1), [#allocation6], 4160  }
  0x2a   : > { %785 = vsyncadd (%p876_p1), [#allocation6], 4294963136  ;;  %v274_v0 = vld [vmem:[#allocation5 + $0xf0] sm:$0xff]  ;;  %v275_v1 = vld [vmem:[#allocation5 + $0xf8] sm:$0xff]  ;;  %vm286_vm0 = vcmask 523264   ;;  %s531_s1 = sshll.u32 %s946_s11, 6 }
  0x2b   : > { %v270_v2 = vld [vmem:[#allocation5 + $0xd0] sm:$0xff]  ;;  %347 = vmatpush.msra.mxu2 %v274_v0  ;;  %370 = vmatpush.msra.mxu3 %v275_v1  ;;  %v271_v3 = vld [vmem:[#allocation5 + $0xd8] sm:$0xff]  ;;  %v272_v6 = vld [vmem:[#allocation5 + $0xe0] sm:$0xff]  ;;  %s546_s20 = sshll.u32 %s804_s15, 6  ;;  %s239_s22 = scalar_lea.vmem [#allocation8], %s531_s1 }
  0x2c   : > { %v266_v4 = vld [vmem:[#allocation5 + $0xb0] sm:$0xff]  ;;  %v267_v5 = vld [vmem:[#allocation5 + $0xb8] sm:$0xff]  ;;  %v273_v7 = vld [vmem:[#allocation5 + $0xe8] sm:$0xff]  ;;  %301 = vmatpush.msra.mxu0 %v272_v6  ;;  %s408_s25 = scalar_lea.hbm %s1015_s3, %s546_s20  ;;  %s409_s30 = sshll.u32 %s239_s22, 4  ;;  %s975_s30 = int_to_ptr.vmem [resolvable:$true] %s409_s30 }
  0x2d   : > { %348 = vmatpush.msra.mxu2 %v270_v2  ;;  %371 = vmatpush.msra.mxu3 %v271_v3  ;;  %v268_v8 = vld [vmem:[#allocation5 + $0xc0] sm:$0xff]  ;;  %v269_v9 = vld [vmem:[#allocation5 + $0xc8] sm:$0xff]  ;;  %v262_v10 = vld [vmem:[#allocation5 + $0x90] sm:$0xff]  ;;  %s411_s4 = sshll.u32 %s408_s25, 4  ;;  %s394_s15 = scalar_lea.sflag [#allocation4], %s946_s11  ;;  %s412_s4 = int_to_ptr.hbm [resolvable:$true] %s411_s4 }
  0x2e   : > { %324 = vmatpush.msra.mxu1 %v273_v7  ;;  %v263_v11 = vld [vmem:[#allocation5 + $0x98] sm:$0xff]  ;;  %v264_v12 = vld [vmem:[#allocation5 + $0xa0] sm:$0xff]  ;;  %v265_v13 = vld [vmem:[#allocation5 + $0xa8] sm:$0xff]  ;;  %302 = vmatpush.msra.mxu0 %v268_v8  ;;  %s740_s5 = sshra.s32 %s412_s4, 4  ;;  %s746_s21 = scalar_lea.hbm %s1015_s3, 128  ;;  %s741_s5 = int_to_ptr.hbm [resolvable:$true] %s740_s5 }
  0x2f   : > { %349 = vmatpush.msra.mxu2 %v266_v4  ;;  %372 = vmatpush.msra.mxu3 %v267_v5  ;;  %v258_v14 = vld [vmem:[#allocation5 + $0x70] sm:$0xff]  ;;  %v259_v15 = vld [vmem:[#allocation5 + $0x78] sm:$0xff]  ;;  %v260_v16 = vld [vmem:[#allocation5 + $0x80] sm:$0xff]  ;;  %s742_s6 = scalar_lea.hbm %s741_s5, 64  ;;  %p747_p10 = scmp.lt.s32.totalorder %s741_s5, %s1015_s3 }
  0x30   : > { %325 = vmatpush.msra.mxu1 %v269_v9  ;;  %v261_v17 = vld [vmem:[#allocation5 + $0x88] sm:$0xff]  ;;  %303 = vmatpush.msra.mxu0 %v264_v12  ;;  %v254_v18 = vld [vmem:[#allocation5 + $0x50] sm:$0xff]  ;;  %v255_v19 = vld [vmem:[#allocation5 + $0x58] sm:$0xff]  ;;  %p743_p1 = scmp.ne.s32.totalorder %s741_s5, %s742_s6  ;;  %p748_p12 = scmp.lt.s32.totalorder %s746_s21, %s742_s6 }
  0x31   : > { %350 = vmatpush.msra.mxu2 %v262_v10  ;;  %373 = vmatpush.msra.mxu3 %v263_v11  ;;  %v256_v20 = vld [vmem:[#allocation5 + $0x60] sm:$0xff]  ;;  %v257_v21 = vld [vmem:[#allocation5 + $0x68] sm:$0xff]  ;;  %v250_v22 = vld [vmem:[#allocation5 + $0x30] sm:$0xff] }
  0x32   : > { %326 = vmatpush.msra.mxu1 %v265_v13  ;;  %304 = vmatpush.msra.mxu0 %v260_v16  ;;  %v251_v23 = vld [vmem:[#allocation5 + $0x38] sm:$0xff]  ;;  %v252_v24 = vld [vmem:[#allocation5 + $0x40] sm:$0xff]  ;;  %v253_v25 = vld [vmem:[#allocation5 + $0x48] sm:$0xff]  ;;  %p744_p4 = pnand %p743_p1, %p925_p7  ;;  %p749_p13 = por %p748_p12, %p747_p10 }
  0x33   : > { %351 = vmatpush.msra.mxu2 %v258_v14  ;;  %374 = vmatpush.msra.mxu3 %v259_v15  ;;  %v246_v26 = vld [vmem:[#allocation5 + $0x10] sm:$0xff]  ;;  %v247_v27 = vld [vmem:[#allocation5 + $0x18] sm:$0xff]  ;;  %v248_v29 = vld [vmem:[#allocation5 + $0x20] sm:$0xff] }
  0x34   : > { %327 = vmatpush.msra.mxu1 %v261_v17  ;;  %305 = vmatpush.msra.mxu0 %v256_v20  ;;  %v242_v28 = vld [vmem:[%s950_s28] sm:$0xff]  ;;  %v249_v30 = vld [vmem:[#allocation5 + $0x28] sm:$0xff]  ;;  %p745_p8 = pneg %p744_p4 }
  0x35   : > { %352 = vmatpush.msra.mxu2 %v254_v18  ;;  %375 = vmatpush.msra.mxu3 %v255_v19  ;;  %v244_v31 = vld [vmem:[#allocation5] sm:$0xff]  ;;  %v245_v32 = vld [vmem:[#allocation5 + $0x8] sm:$0xff] }
  0x36   : > { %328 = vmatpush.msra.mxu1 %v257_v21  ;;  %306 = vmatpush.msra.mxu0 %v252_v24  ;;  %v243_v33 = vld [vmem:[%s950_s28 + $0x8] sm:$0xff]  ;;  %v276_v34 = vld [vmem:[#allocation7] sm:$0xf]  ;;  %p750_p0 = pnand %p749_p13, %p745_p8 }
  0x37   : > { %353 = vmatpush.msra.mxu2 %v250_v22  ;;  %376 = vmatpush.msra.mxu3 %v251_v23  ;;  %v278_v35 = vperm.slane %v276_v34, 0  ;;  %v279_v36 = vperm.slane %v276_v34, 1  ;;  %v280_v37 = vperm.slane %v276_v34, 2  ;;  %v281_v38 = vperm.slane %v276_v34, 3 }
  0x38   : > { %329 = vmatpush.msra.mxu1 %v253_v25  ;;  %307 = vmatpush.msra.mxu0 %v248_v29 }
  0x39   : > { %354 = vmatpush.msra.mxu2 %v246_v26  ;;  %377 = vmatpush.msra.mxu3 %v247_v27 }
  0x3a   : > { %536 = vmatmul.msk.f32.vlgmr.msra.gmra.mxu2 %vm286_vm0, %v242_v28  ;;  %538 = vmatmul.msk.f32.vlgmr.msra.gmra.mxu3 %vm286_vm0, %v242_v28 }
  0x3b   : > { %330 = vmatpush.msra.mxu1 %v249_v30  ;;  %308 = vmatpush.msra.mxu0 %v244_v31 }
  0x3c   : > { %532 = vmatmul.msk.f32.vlgmr.msra.gmra.mxu0 %vm286_vm0, %v242_v28 }
  0x3d   : > { %331 = vmatpush.msra.mxu1 %v245_v32 }
  0x3e   : > { %534 = vmatmul.msk.f32.vlgmr.msra.gmra.mxu1 %vm286_vm0, %v242_v28 }
  0x42   : > { %537 = vmatmul.msk.f32.gmra.mxu2 %vm286_vm0, %v243_v33  ;;  %539 = vmatmul.msk.f32.gmra.mxu3 %vm286_vm0, %v243_v33 }
  0x44   : > { %533 = vmatmul.msk.f32.gmra.mxu0 %vm286_vm0, %v243_v33 }
  0x46   : > { %535 = vmatmul.msk.f32.gmra.mxu1 %vm286_vm0, %v243_v33 }
  0xb9   : > { %v310_v39 = vpop.f32.mrf.mxu0 }
  0xba   : > { %v311_v41 = vadd.f32 %v310_v39, %v278_v35 }
  0xbb   : > { %v333_v40 = vpop.f32.mrf.mxu1 }
  0xbc   : > { %v334_v42 = vadd.f32 %v333_v40, %v279_v36  ;;  %385 = vst [vmem:[%s239_s22] sm:$0xff] %v311_v41 }
  0xbd   : > { %v356_v43 = vpop.f32.mrf.mxu2  ;;  %v379_v44 = vpop.f32.mrf.mxu3 }
  0xbe   : > { %v357_v45 = vadd.f32 %v356_v43, %v280_v37  ;;  %v380_v46 = vadd.f32 %v379_v44, %v281_v38  ;;  %386 = vst [vmem:[%s239_s22 + $0x8] sm:$0xff] %v334_v42 }
  0xc0   : > { %387 = vst [vmem:[%s239_s22 + $0x10] sm:$0xff] %v357_v45 }
  0xc1   : > { %388 = vst [vmem:[%s239_s22 + $0x18] sm:$0xff] %v380_v46  ;;  %v313_v47 = vpop.f32.mrf.mxu0 }
  0xc2   : > { %v314_v49 = vadd.f32 %v313_v47, %v278_v35 }
  0xc3   : > { %v336_v48 = vpop.f32.mrf.mxu1 }
  0xc4   : > { %v337_v50 = vadd.f32 %v336_v48, %v279_v36  ;;  %389 = vst [vmem:[%s239_s22 + $0x20] sm:$0xff] %v314_v49 }
  0xc5   : > { %v359_v51 = vpop.f32.mrf.mxu2  ;;  %v382_v52 = vpop.f32.mrf.mxu3 }
  0xc6   : > { %v360_v53 = vadd.f32 %v359_v51, %v280_v37  ;;  %v383_v54 = vadd.f32 %v382_v52, %v281_v38  ;;  %390 = vst [vmem:[%s239_s22 + $0x28] sm:$0xff] %v337_v50 }
  0xc8   : > { %391 = vst [vmem:[%s239_s22 + $0x30] sm:$0xff] %v360_v53 }
  0xc9   : > { %392 = vst [vmem:[%s239_s22 + $0x38] sm:$0xff] %v383_v54 }
  0xca   : > { %753 = shalt.err (!%p750_p0)
}
  0xcb   : > { %s820_s11 = smov 512   ;;  %s821_s26 = smov 32  }
  0xcc   : > { %557 = dma.vmem_to_hbm [thread:$0]  (%p925_p7), %s975_s30, 1024, %s412_s4, %s394_s15, %s820_s11, %s820_s11, %s821_s26  }
  0xcd PF: > { %s426_s28 = sand.u32 1, %s792_s12   ;;  %p571_p3 = pnand %p523_p11, %p891_p6 }
  0xce   : > { %s427_s1 = scalar_lea.sflag [#allocation4], %s426_s28 }
  0xcf   : > { %p572_p5 = pneg %p571_p3 }
  0xd1   : > { %787 = dma.done.wait (%p572_p5), %s427_s1, 1024  }
  0xd2   : > { %789 = vsyncadd (%p572_p5), %s427_s1, 4294966272  ;;  %s20_s17 = sadd.s32 1, %s812_s17   ;;  %s1025_s12 = smov %s796_s13 }
  0xd3   : > { %p17_p9 = scmp.ge.s32.totalorder %s20_s17, 4   ;;  %s1026_s13 = smov %s800_s14 }
  0xd4   : > { %s1027_s14 = smov %s934_s29  ;;  %s1028_s15 = smov %s808_s16 }
  0xd5   : > { %s1029_s16 = smov %s1031_s10  ;;  %19 = sbr.rel (!%p17_p9) target bundleno = 9 (0x9), region = 85 }
  0xda   :  { %433 = vsyncpa [#allocation3], 1 }
  0xdb   :  { %435 = vsyncpa [#allocation3 + $0x1], 1 }
  0xdc   :  { %436 = vsyncpa [#allocation6], 1 }
  0xdd   :  { %437 = vsyncpa [#allocation4], 1 }
  0xde   :  { %439 = vsyncpa [#allocation4 + $0x1], 1 }

</bundles_post_ra>
